<compile_context>
chip_gen: v6e
topology: v6e:2x2x1
jax: 0.10.0
libtpu: 0.0.40
codegen_flags: <defaults>
</compile_context>

<pallas_src>
import functools

import jax
import jax.numpy as jnp
from jax import lax
from jax.experimental import pallas as pl
from jax.experimental.pallas import tpu as pltpu


# Row (sublane) tile candidates: multiples of 8 (bf16/f32 packing safe).
_ROW_TILES = (512, 256, 128, 64, 32, 16, 8)
# Column / reduction (lane) tile candidates: multiples of 128.
_LANE_TILES = (512, 256, 128)

_VMEM_LIMIT_CACHE = None


def _vmem_limit():
    """Per-generation scoped VMEM limit: ~48 MiB on v7x, ~96 MiB on v5e/v6e."""
    global _VMEM_LIMIT_CACHE
    if _VMEM_LIMIT_CACHE is None:
        try:
            cap = int(pltpu.get_tpu_info().vmem_capacity_bytes)
        except Exception:
            cap = 64 * 1024 * 1024          # conservative fallback
        _VMEM_LIMIT_CACHE = max(32 * 1024 * 1024,
                                min(cap * 3 // 4, 96 * 1024 * 1024))
    return _VMEM_LIMIT_CACHE


def _round_up(x, m):
    return ((x + m - 1) // m) * m


def _pick_tile(dim, candidates):
    """Largest candidate that divides `dim`; else the full dim (always legal)."""
    for c in candidates:
        if c <= dim and dim % c == 0:
            return c
    return dim


def _pick_row_tile(n_rows, bytes_per_row):
    """Row tile bounded by a VMEM-derived budget (avoids huge-acc fallbacks)."""
    budget = _vmem_limit() // 8
    max_rows = max(8, budget // max(bytes_per_row, 1))
    for c in _ROW_TILES:
        if c <= max_rows and c <= n_rows and n_rows % c == 0:
            return c
    return n_rows


def _pick_kv_tile(T, E):
    """KV tile: full T when K+V (double buffered, bf16) fit ~8 MiB, else tiled."""
    budget = 8 * 1024 * 1024
    max_rows = max(128, budget // (8 * max(E, 1)))
    if T <= max_rows:
        return T
    for c in (2048, 1024, 512, 256, 128):
        if c <= max_rows and T % c == 0:
            return c
    return T


# --------------------------------------------------------------------------
# Kernels
# --------------------------------------------------------------------------

def _matmul_bias_kernel(x_ref, w_ref, b_ref, o_ref, acc_ref, *,
                        k_axis: int, apply_relu: bool):
    """Tiled (tm,tk)x(tk,tn) matmul + bias (+relu). f32 accumulator in VMEM."""
    @pl.when(pl.program_id(k_axis) == 0)
    def _():
        acc_ref[...] = jnp.zeros_like(acc_ref)

    acc_ref[...] += jnp.dot(
        x_ref[...].astype(jnp.bfloat16),
        w_ref[...].astype(jnp.bfloat16),
        preferred_element_type=jnp.float32,
    )

    @pl.when(pl.program_id(k_axis) == pl.num_programs(k_axis) - 1)
    def _():
        y = acc_ref[...] + b_ref[...]
        if apply_relu:
            y = jnp.maximum(y, 0.0)
        o_ref[...] = y.astype(o_ref.dtype)


def _linear_residual_ln_kernel(x_ref, w_ref, b_ref, res_ref, g_ref, beta_ref,
                               o_ref, acc_ref, *, eps: float):
    """Tiled matmul + bias, fused with (+residual -> LayerNorm) epilogue.

    Output tile spans the full feature dim E so LN is computed in-register,
    saving two full (N,E) HBM round trips vs a separate add+LN kernel.
    """
    @pl.when(pl.program_id(1) == 0)
    def _():
        acc_ref[...] = jnp.zeros_like(acc_ref)

    acc_ref[...] += jnp.dot(
        x_ref[...].astype(jnp.bfloat16),
        w_ref[...].astype(jnp.bfloat16),
        preferred_element_type=jnp.float32,
    )

    @pl.when(pl.program_id(1) == pl.num_programs(1) - 1)
    def _():
        y = acc_ref[...] + b_ref[...] + res_ref[...].astype(jnp.float32)
        mu = jnp.mean(y, axis=-1, keepdims=True)
        c = y - mu
        var = jnp.mean(c * c, axis=-1, keepdims=True)
        o_ref[...] = (c * lax.rsqrt(var + eps) * g_ref[...]
                      + beta_ref[...]).astype(o_ref.dtype)


def _attn_kernel(q_ref, k_ref, v_ref, m_ref, o_ref, m_sc, l_sc, acc_sc, *,
                 num_heads: int, head_dim: int):
    """Flash-style self-attention for one (batch, q-tile, kv-tile) grid step.

    q_ref: (tq, E)  bf16          m_ref: (1, tkv) f32 key-pad mask (1=padded)
    k_ref: (tkv, E) bf16          o_ref: (tq, E)  lane-dense output tile
    v_ref: (tkv, E) bf16          scratches: m/l (tq, H) f32, acc (tq, E) f32
    The 1/sqrt(head_dim) scale is pre-folded into the Q projection weights.
    """
    kvi = pl.program_id(2)

    @pl.when(kvi == 0)
    def _():
        m_sc[...] = jnp.full(m_sc.shape, -jnp.inf, m_sc.dtype)
        l_sc[...] = jnp.zeros_like(l_sc)
        acc_sc[...] = jnp.zeros_like(acc_sc)

    bias = m_ref[...] * jnp.float32(-1e9)        # (1, tkv), broadcast over rows
    q = q_ref[...]                               # (tq, E) bf16
    k = k_ref[...]                               # (tkv, E)
    v = v_ref[...]

    # TODO(synk): per-head column slices below are head_dim-wide (not 128-lane
    # aligned); a per-head (B,H,T,hd) layout with a head grid axis would remove
    # the XLU shuffles at the cost of an extra HBM layout pass.
    for h in range(num_heads):
        sl = slice(h * head_dim, (h + 1) * head_dim)
        s = lax.dot_general(q[:, sl], k[:, sl], (((1,), (1,)), ((), ())),
                            preferred_element_type=jnp.float32)   # (tq, tkv)
        s = s + bias

        m_prev = m_sc[:, h:h + 1]
        m_new = jnp.maximum(m_prev, jnp.max(s, axis=-1, keepdims=True))
        alpha = jnp.exp(m_prev - m_new)
        p = jnp.exp(s - m_new)

        l_sc[:, h:h + 1] = alpha * l_sc[:, h:h + 1] + jnp.sum(p, -1, keepdims=True)
        acc_sc[:, sl] = alpha * acc_sc[:, sl] + jnp.dot(
            p.astype(v.dtype), v[:, sl], preferred_element_type=jnp.float32)
        m_sc[:, h:h + 1] = m_new

    @pl.when(kvi == pl.num_programs(2) - 1)
    def _():
        inv_l = pl.reciprocal(l_sc[...], approx=True)    # (tq, H)
        for h in range(num_heads):
            sl = slice(h * head_dim, (h + 1) * head_dim)
            acc_sc[:, sl] = acc_sc[:, sl] * inv_l[:, h:h + 1]
        o_ref[...] = acc_sc[...].astype(o_ref.dtype)     # single lane-dense store


# --------------------------------------------------------------------------
# Wrappers
# --------------------------------------------------------------------------

def linear_pallas(x, w_t, b, *, apply_relu=False, out_dtype=jnp.bfloat16):
    """x: (N, K), w_t: (K, M) (transposed from PyTorch (M,K)), b: (M,)."""
    N, K = x.shape
    M = w_t.shape[1]
    tn = _pick_tile(M, _LANE_TILES)
    tk = _pick_tile(K, _LANE_TILES)
    tm = _pick_row_tile(N, 4 * (tn + tk))
    grid = (N // tm, M // tn, K // tk)

    kern = functools.partial(_matmul_bias_kernel, k_axis=2, apply_relu=apply_relu)
    return pl.pallas_call(
        kern,
        out_shape=jax.ShapeDtypeStruct((N, M), out_dtype),
        grid=grid,
        in_specs=[
            pl.BlockSpec((tm, tk), lambda i, j, k: (i, k)),
            pl.BlockSpec((tk, tn), lambda i, j, k: (k, j)),
            pl.BlockSpec((1, tn), lambda i, j, k: (0, j)),
        ],
        out_specs=pl.BlockSpec((tm, tn), lambda i, j, k: (i, j)),
        scratch_shapes=[pltpu.VMEM((tm, tn), jnp.float32)],
        compiler_params=pltpu.CompilerParams(
            dimension_semantics=("parallel", "parallel", "arbitrary"),
            vmem_limit_bytes=_vmem_limit()),
    )(x, w_t, b.reshape(1, M))


def qkv_proj_pallas(x, w3_t, b3, *, out_dtype=jnp.bfloat16):
    """Fused QKV projection.

    x: (N, E); w3_t: (3, E, E) with w3_t[p] = W_p^T; b3: (3, E).
    Returns (3, N, E) so the attention kernel addresses Q/K/V as clean
    per-projection blocks (no DMA of the fused 3E axis).
    """
    N, K = x.shape
    E = w3_t.shape[2]
    tn = _pick_tile(E, _LANE_TILES)
    tk = _pick_tile(K, _LANE_TILES)
    tm = _pick_row_tile(N, 4 * (tn + tk))
    grid = (3, N // tm, E // tn, K // tk)

    kern = functools.partial(_matmul_bias_kernel, k_axis=3, apply_relu=False)
    return pl.pallas_call(
        kern,
        out_shape=jax.ShapeDtypeStruct((3, N, E), out_dtype),
        grid=grid,
        in_specs=[
            pl.BlockSpec((tm, tk), lambda p, i, j, k: (i, k)),
            pl.BlockSpec((None, tk, tn), lambda p, i, j, k: (p, k, j)),
            pl.BlockSpec((None, 1, tn), lambda p, i, j, k: (p, 0, j)),
        ],
        out_specs=pl.BlockSpec((None, tm, tn), lambda p, i, j, k: (p, i, j)),
        scratch_shapes=[pltpu.VMEM((tm, tn), jnp.float32)],
        compiler_params=pltpu.CompilerParams(
            dimension_semantics=("parallel", "parallel", "parallel", "arbitrary"),
            vmem_limit_bytes=_vmem_limit()),
    )(x, w3_t, b3.reshape(3, 1, E))


def linear_residual_ln_pallas(x, w_t, b, residual, gamma, beta, *,
                              eps=1e-5, out_dtype=jnp.bfloat16):
    """(x @ w_t + b + residual) -> LayerNorm over last dim."""
    N, K = x.shape
    E = w_t.shape[1]
    tk = _pick_tile(K, _LANE_TILES)
    tm = _pick_row_tile(N, 16 * E)
    grid = (N // tm, K // tk)

    kern = functools.partial(_linear_residual_ln_kernel, eps=eps)
    return pl.pallas_call(
        kern,
        out_shape=jax.ShapeDtypeStruct((N, E), out_dtype),
        grid=grid,
        in_specs=[
            pl.BlockSpec((tm, tk), lambda i, k: (i, k)),
            pl.BlockSpec((tk, E), lambda i, k: (k, 0)),
            pl.BlockSpec((1, E), lambda i, k: (0, 0)),
            pl.BlockSpec((tm, E), lambda i, k: (i, 0)),
            pl.BlockSpec((1, E), lambda i, k: (0, 0)),
            pl.BlockSpec((1, E), lambda i, k: (0, 0)),
        ],
        out_specs=pl.BlockSpec((tm, E), lambda i, k: (i, 0)),
        scratch_shapes=[pltpu.VMEM((tm, E), jnp.float32)],
        compiler_params=pltpu.CompilerParams(
            dimension_semantics=("parallel", "arbitrary"),
            vmem_limit_bytes=_vmem_limit()),
    )(x, w_t, b.reshape(1, E), residual, gamma.reshape(1, E), beta.reshape(1, E))


def attention_pallas(qkv3, mask3, *, num_heads, head_dim):
    """qkv3: (3, B, T, E) bf16 fused projections; mask3: (B, 1, T) f32 (1=padded)."""
    _, B, T, E = qkv3.shape
    kv_tile = _pick_kv_tile(T, E)
    tq = _pick_row_tile(T, 6 * E + 4 * kv_tile)
    grid = (B, T // tq, T // kv_tile)

    kern = functools.partial(_attn_kernel, num_heads=num_heads, head_dim=head_dim)
    return pl.pallas_call(
        kern,
        out_shape=jax.ShapeDtypeStruct((B, T, E), jnp.bfloat16),
        grid=grid,
        in_specs=[
            pl.BlockSpec((None, None, tq, E), lambda b, qi, ki: (0, b, qi, 0)),       # Q
            pl.BlockSpec((None, None, kv_tile, E), lambda b, qi, ki: (1, b, ki, 0)),  # K
            pl.BlockSpec((None, None, kv_tile, E), lambda b, qi, ki: (2, b, ki, 0)),  # V
            pl.BlockSpec((None, 1, kv_tile), lambda b, qi, ki: (b, 0, ki)),           # mask
        ],
        out_specs=pl.BlockSpec((None, tq, E), lambda b, qi, ki: (b, qi, 0)),
        scratch_shapes=[
            pltpu.VMEM((tq, num_heads), jnp.float32),   # running max per head
            pltpu.VMEM((tq, num_heads), jnp.float32),   # running sum per head
            pltpu.VMEM((tq, E), jnp.float32),           # output accumulator
        ],
        compiler_params=pltpu.CompilerParams(
            dimension_semantics=("parallel", "parallel", "arbitrary"),
            vmem_limit_bytes=_vmem_limit()),
    )(qkv3, qkv3, qkv3, mask3)


# --------------------------------------------------------------------------
# Full encoder layer forward (post-norm, eval mode)
# --------------------------------------------------------------------------

def transformer_encoder_layer(x, encoder_padding_mask, params, num_heads):
    """x: (T, B, E) float32; encoder_padding_mask: (B, T), 1.0 = padded.

    Returns the encoded output of shape (T, B, E) (l_aux is None / omitted).
    `params["wqkv_t"]` must have the 1/sqrt(head_dim) query scale pre-folded
    into plane 0 (done by `init_params` / `fold_q_scale`).
    """
    T, B, E = x.shape
    H = num_heads
    hd = E // H

    # Pad T so row/KV tiles always divide (padded keys are masked out; padded
    # query rows are computed then dropped -- LN/FFN are row-local).
    T_pad = _round_up(T, 8) if T <= 512 else _round_up(T, 128)
    mask = encoder_padding_mask.astype(jnp.float32)
    if T_pad != T:
        x = jnp.pad(x, ((0, T_pad - T), (0, 0), (0, 0)))
        mask = jnp.pad(mask, ((0, 0), (0, T_pad - T)), constant_values=1.0)
    N = B * T_pad

    # Single layout change: (T,B,E) -> (B,T,E). Residual kept f32; matmul
    # input cast to bf16 once (halves QKV-matmul activation reads).
    xb = jnp.transpose(x, (1, 0, 2)).reshape(N, E)          # f32 residual
    xb_bf = xb.astype(jnp.bfloat16)

    # --- self-attention block ---
    qkv3 = qkv_proj_pallas(xb_bf, params["wqkv_t"], params["bqkv"])   # (3,N,E) bf16
    qkv3 = qkv3.reshape(3, B, T_pad, E)
    mask3 = mask.reshape(B, 1, T_pad)

    ctx = attention_pallas(qkv3, mask3, num_heads=H, head_dim=hd)     # (B,T,E) bf16
    ctx = ctx.reshape(N, E)

    # out_proj + (dropout = id) + residual + LayerNorm, fused; bf16 activations.
    y1 = linear_residual_ln_pallas(ctx, params["wo_t"], params["bo"], xb,
                                   params["ln1_g"], params["ln1_b"],
                                   out_dtype=jnp.bfloat16)

    # --- FFN block ---
    h = linear_pallas(y1, params["w1_t"], params["b1"],
                      apply_relu=True, out_dtype=jnp.bfloat16)        # (N, F)
    # fc2 + (dropout = id) + residual + LayerNorm, fused; final output in f32.
    y2 = linear_residual_ln_pallas(h, params["w2_t"], params["b2"], y1,
                                   params["ln2_g"], params["ln2_b"],
                                   out_dtype=jnp.float32)

    y2 = y2.reshape(B, T_pad, E)[:, :T, :]
    return jnp.transpose(y2, (1, 0, 2))


# --------------------------------------------------------------------------
# Parameter construction (deterministic, synthetic)
# --------------------------------------------------------------------------

def fold_q_scale(wqkv_t, bqkv, num_heads):
    """Fold the softmax 1/sqrt(head_dim) scale into the Q projection (plane 0)."""
    E = wqkv_t.shape[1]
    scale = float(E // num_heads) ** -0.5
    w = wqkv_t.astype(jnp.float32).at[0].multiply(scale)
    b = bqkv.astype(jnp.float32).at[0].multiply(scale)
    return w.astype(wqkv_t.dtype), b.astype(bqkv.dtype)


def init_params(key, embed_dim, ffn_dim, num_heads):
    ks = jax.random.split(key, 8)
    E, F = embed_dim, ffn_dim
    s = 0.05

    def nrm(k, shape):
        return jax.random.normal(k, shape, jnp.float32) * s

    # PyTorch nn.Linear weights are (out, in); stored transposed (in, out).
    # QKV stacked as (3, E, E): wqkv_t[p] = W_p^T for p in {q, k, v}.
    wqkv = nrm(ks[0], (3, E, E))
    bqkv = nrm(ks[1], (3, E))
    wqkv, bqkv = fold_q_scale(wqkv, bqkv, num_heads)   # free at init time

    return {
        "wqkv_t": wqkv.astype(jnp.bfloat16), "bqkv": bqkv.astype(jnp.float32),
        "wo_t": nrm(ks[2], (E, E)).astype(jnp.bfloat16), "bo": nrm(ks[3], (E,)),
        "w1_t": nrm(ks[4], (E, F)).astype(jnp.bfloat16), "b1": nrm(ks[5], (F,)),
        "w2_t": nrm(ks[6], (F, E)).astype(jnp.bfloat16), "b2": nrm(ks[7], (E,)),
        # LayerNorm init matches PyTorch: gamma=1, beta=0
        "ln1_g": jnp.ones((E,), jnp.float32), "ln1_b": jnp.zeros((E,), jnp.float32),
        "ln2_g": jnp.ones((E,), jnp.float32), "ln2_b": jnp.zeros((E,), jnp.float32),
    }


if __name__ == "__main__":
    T, B, E, H, F = 8, 2, 32, 4, 64   # seq_len, batch, embed_dim, heads, ffn_dim

    key = jax.random.PRNGKey(0)
    kx, kp = jax.random.split(key)
    x = jax.random.normal(kx, (T, B, E), jnp.float32)
    # no padding (all valid tokens); 1 would mark a padded position
    encoder_padding_mask = jnp.zeros((B, T), jnp.float32)

    params = init_params(kp, E, F, H)

    out = transformer_encoder_layer(x, encoder_padding_mask, params, num_heads=H)
    out = jax.block_until_ready(out)

    assert out.shape == (T, B, E)
    assert jnp.all(jnp.isfinite(out))
    print("KERNEL_OK")
</pallas_src>

<mosaic_0001>
module attributes {stable_mosaic.version = 11 : i64} {
  func.func @_matmul_bias_kernel(%arg0: i32, %arg1: i32, %arg2: i32, %arg3: i32, %arg4: memref<16x32xbf16, #tpu.memory_space<vmem>>, %arg5: memref<1x32x32xbf16, #tpu.memory_space<vmem>>, %arg6: memref<1x1x32xf32, #tpu.memory_space<vmem>>, %arg7: memref<1x16x32xbf16, #tpu.memory_space<vmem>>, %arg8: memref<16x32xf32, #tpu.memory_space<vmem>>) attributes {dimension_semantics = [#tpu.dimension_semantics<parallel>, #tpu.dimension_semantics<parallel>, #tpu.dimension_semantics<parallel>, #tpu.dimension_semantics<arbitrary>], iteration_bounds = array<i64: 3, 1, 1, 1>, scalar_prefetch = 0 : i64, scratch_operands = 1 : i64, tpu.core_type = #tpu.core_type<tc>, window_params = [{transform_indices = @transform_0, window_bounds = array<i64: 16, 32>}, {transform_indices = @transform_1, window_bounds = array<i64: 1, 32, 32>}, {transform_indices = @transform_2, window_bounds = array<i64: 1, 1, 32>}, {transform_indices = @transform_3, window_bounds = array<i64: 1, 16, 32>}]} {
    %c0_i32 = arith.constant 0 : i32
    %0 = arith.cmpi eq, %arg3, %c0_i32 : i32
    %1 = arith.extui %0 : i1 to i32
    %c0_i32_0 = arith.constant 0 : i32
    %2 = arith.cmpi ne, %1, %c0_i32_0 : i32
    scf.if %2 {
      %cst_11 = arith.constant 0.000000e+00 : f32
      %13 = vector.broadcast %cst_11 : f32 to vector<16x32xf32>
      %c0_12 = arith.constant 0 : index
      %c0_13 = arith.constant 0 : index
      %14 = vector.load %arg8[%c0_12, %c0_13] : memref<16x32xf32, #tpu.memory_space<vmem>>, vector<16x32xf32>
      tpu.vector_store %arg8[%c0_12, %c0_13], %13 {strides = array<i32>} : memref<16x32xf32, #tpu.memory_space<vmem>>, vector<16x32xf32>,
    } else {
    }
    %c0 = arith.constant 0 : index
    %c0_1 = arith.constant 0 : index
    %3 = vector.load %arg8[%c0, %c0_1] : memref<16x32xf32, #tpu.memory_space<vmem>>, vector<16x32xf32>
    %c0_2 = arith.constant 0 : index
    %c0_3 = arith.constant 0 : index
    %4 = vector.load %arg4[%c0_2, %c0_3] : memref<16x32xbf16, #tpu.memory_space<vmem>>, vector<16x32xbf16>
    %c0_4 = arith.constant 0 : index
    %c0_5 = arith.constant 0 : index
    %c0_6 = arith.constant 0 : index
    %5 = vector.load %arg5[%c0_4, %c0_5, %c0_6] : memref<1x32x32xbf16, #tpu.memory_space<vmem>>, vector<1x32x32xbf16>
    %6 = vector.shape_cast %5 : vector<1x32x32xbf16> to vector<32x32xbf16>
    %cst = arith.constant dense<0.000000e+00> : vector<16x32xf32>
    %7 = tpu.matmul %4, %6, %cst {dimension_numbers = #tpu.dot_dimension_numbers<[1], [0], [0], [1], [0, 0, 1, 1], [], []>} : vector<16x32xbf16>, vector<32x32xbf16>, vector<16x32xf32> -> vector<16x32xf32>
    %8 = arith.addf %3, %7 : vector<16x32xf32>
    %c0_7 = arith.constant 0 : index
    %c0_8 = arith.constant 0 : index
    %9 = vector.load %arg8[%c0_7, %c0_8] : memref<16x32xf32, #tpu.memory_space<vmem>>, vector<16x32xf32>
    tpu.vector_store %arg8[%c0_7, %c0_8], %8 {strides = array<i32>} : memref<16x32xf32, #tpu.memory_space<vmem>>, vector<16x32xf32>,
    %c0_i32_9 = arith.constant 0 : i32
    %10 = arith.cmpi eq, %arg3, %c0_i32_9 : i32
    %11 = arith.extui %10 : i1 to i32
    %c0_i32_10 = arith.constant 0 : i32
    %12 = arith.cmpi ne, %11, %c0_i32_10 : i32
    scf.if %12 {
      %c0_11 = arith.constant 0 : index
      %c0_12 = arith.constant 0 : index
      %13 = vector.load %arg8[%c0_11, %c0_12] : memref<16x32xf32, #tpu.memory_space<vmem>>, vector<16x32xf32>
      %c0_13 = arith.constant 0 : index
      %c0_14 = arith.constant 0 : index
      %c0_15 = arith.constant 0 : index
      %14 = vector.load %arg6[%c0_13, %c0_14, %c0_15] : memref<1x1x32xf32, #tpu.memory_space<vmem>>, vector<1x1x32xf32>
      %15 = vector.shape_cast %14 : vector<1x1x32xf32> to vector<1x32xf32>
      %16 = vector.broadcast %15 : vector<1x32xf32> to vector<16x32xf32>
      %17 = arith.addf %13, %16 : vector<16x32xf32>
      %18 = arith.truncf %17 : vector<16x32xf32> to vector<16x32xbf16>
      %c0_16 = arith.constant 0 : index
      %c0_17 = arith.constant 0 : index
      %c0_18 = arith.constant 0 : index
      %19 = vector.load %arg7[%c0_16, %c0_17, %c0_18] : memref<1x16x32xbf16, #tpu.memory_space<vmem>>, vector<1x16x32xbf16>
      %20 = vector.shape_cast %19 : vector<1x16x32xbf16> to vector<16x32xbf16>
      %21 = vector.shape_cast %18 : vector<16x32xbf16> to vector<1x16x32xbf16>
      tpu.vector_store %arg7[%c0_16, %c0_17, %c0_18], %21 {strides = array<i32>} : memref<1x16x32xbf16, #tpu.memory_space<vmem>>, vector<1x16x32xbf16>,
    } else {
    }
    return
  }
  func.func @transform_0(%arg0: i32, %arg1: i32, %arg2: i32, %arg3: i32) -> (i32, i32) {
    %c0_i32 = arith.constant 0 : i32
    return %arg1, %arg3 : i32, i32
  }
  func.func @transform_1(%arg0: i32, %arg1: i32, %arg2: i32, %arg3: i32) -> (i32, i32, i32) {
    %c0_i32 = arith.constant 0 : i32
    return %arg0, %arg3, %arg2 : i32, i32, i32
  }
  func.func @transform_2(%arg0: i32, %arg1: i32, %arg2: i32, %arg3: i32) -> (i32, i32, i32) {
    %c0_i32 = arith.constant 0 : i32
    %c0_i32_0 = arith.constant 0 : i32
    return %arg0, %c0_i32, %arg2 : i32, i32, i32
  }
  func.func @transform_3(%arg0: i32, %arg1: i32, %arg2: i32, %arg3: i32) -> (i32, i32, i32) {
    %c0_i32 = arith.constant 0 : i32
    return %arg0, %arg1, %arg2 : i32, i32, i32
  }
}

</mosaic_0001>

<bundles_post_ra>
// kernel: tpu_custom_call.1
= control target key start
LH: loop header
LB: loop body
LE: loop exit
PB: predicated region body
PF: predicated region fallthrough
CT: control target
= control target key end

     0   :  { %8 = vsyncpa [#allocation4], 0  ;;  %s1013_s0 = inlined_call_operand.hbm [shape: bf16[16,32], index: 0, kind: input, shape index: {}]   ;;  %s1014_s1 = inlined_call_operand.hbm [shape: bf16[3,32,32], index: 1, kind: input, shape index: {}]   ;;  %s1015_s2 = inlined_call_operand.vmem [shape: f32[3,1,32], index: 2, kind: input, shape index: {}]   ;;  %s1016_s3 = inlined_call_operand.hbm [shape: bf16[3,16,32], index: 3, kind: output, shape index: {}]  }
   0x1   :  { %9 = vsyncpa [#allocation7], 0 }
   0x2   :  { %11 = vsyncpa [#allocation7 + $0x1], 0 }
   0x3   :  { %12 = vsyncpa [#allocation5], 0 }
   0x4   :  { %14 = vsyncpa [#allocation5 + $0x1], 0  ;;  %s817_s12 = smov 0   ;;  %s819_s13 = smov 0  }
   0x5   :  { %s821_s14 = smov 0   ;;  %s823_s15 = smov 0  }
   0x6   :  { %s825_s16 = smov 0   ;;  %s827_s17 = smov 0  }
   0x7 LB: > { %s527_s18 = sadd.s32 4294967295, %s786_s17   ;;  %s528_s19 = sadd.s32 4294967294, %s786_s17   ;;  %s786_s17 = sphi %s827_s17, %s20_s17   ;;  %s782_s16 = sphi %s825_s16, %s1037_s16   ;;  %s778_s15 = sphi %s823_s15, %s1036_s15   ;;  %s774_s14 = sphi %s821_s14, %s1035_s14   ;;  %s770_s13 = sphi %s819_s13, %s1034_s13   ;;  %s766_s12 = sphi %s817_s12, %s1033_s12  }
   0x8   : > { %p98_p0 = scmp.ne.s32.totalorder %s770_s13, %s766_s12  ;;  %p851_p1 = scmp.eq.s32.totalorder %s527_s18, 0 }
   0x9   : > { %p855_p2 = scmp.eq.s32.totalorder %s527_s18, 2  ;;  %p160_p3 = scmp.eq.s32.totalorder %s528_s19, 2 }
   0xa   : > { %p861_p4 = por %p851_p1, %p98_p0  ;;  %p529_p5 = scmp.ge.s32.totalorder %s786_s17, 1 }
   0xb   : > { %p866_p6 = por %p160_p3, %p98_p0  ;;  %p167_p7 = scmp.lt.s32.totalorder %s786_s17, 4 }
   0xc   : > { %s788_s25 = smov [#allocation3]   ;;  %s46_s28 = sadd.s32 1, %s782_s16 }
   0xd   : > { %s1023_s23 = scalar_select %p866_p6, 1, 0 }
   0xe   : > { %p871_p8 = pnand %p529_p5, %p167_p7  ;;  %s183_s26 = sshll.u32 %s788_s25, 4  ;;  %s184_s26 = int_to_ptr.vmem [resolvable:$true] %s183_s26 }
   0xf   : > { %s659_s29 = scalar_lea.vmem %s184_s26, 128  ;;  %p667_p3 = scmp.lt.s32.totalorder %s184_s26, %s184_s26 }
  0x10   : > { %p574_p9 = pneg %p871_p8  ;;  %p660_p12 = scmp.ne.s32.totalorder %s184_s26, %s659_s29 }
  0x11   : > { %p668_p5 = scmp.lt.s32.totalorder %s659_s29, %s659_s29 }
  0x12   : > { %p879_p10 = pnand %p574_p9, %p851_p1 }
  0x13   : > { %p669_p7 = por %p668_p5, %p667_p3 }
  0x14   : > { %p650_p11 = pneg %p879_p10 }
  0x16   : > { %p662_p13 = pnand %p660_p12, %p650_p11 }
  0x18   : > { %p663_p0 = pneg %p662_p13 }
  0x1a   : > { %p670_p6 = pnand %p669_p7, %p663_p0 }
  0x1c   : > { %673 = shalt.err (!%p670_p6)
}
  0x1d   : > { %s1017_s30 = smov 64   ;;  %s1018_s4 = smov 4  }
  0x1e   : > { %577 = dma.hbm_to_vmem [thread:$0]  (!%p879_p10), %s1013_s0, 128, %s184_s26, [#allocation4], %s1017_s30, %s1017_s30, %s1018_s4  }
  0x1f   : > { %p48_p6 = scmp.ge.s32.totalorder %s46_s28, 3  ;;  %s85_s7 = sadd.s32 1, %s774_s14 }
  0x20   : > { %p92_p9 = scmp.ne.s32.totalorder %s774_s14, %s770_s13  ;;  %p93_p11 = scmp.eq.s32.totalorder %s786_s17, 0 }
  0x21   : > { %s1039_s28 = smov (%p48_p6, %s46_s28), 0  ;;  %p587_p0 = scmp.lt.s32.totalorder %s786_s17, 3 }
  0x22   : > { %p900_p12 = por %p93_p11, %p92_p9  ;;  %p906_p13 = por %p855_p2, %p92_p9 }
  0x23   : > { %s78_s10 = ssub.s32 %s782_s16, %s1039_s28  ;;  %s197_s11 = sand.u32 1, %s774_s14  }
  0x24   : > { %s1027_s9 = scalar_select %p906_p13, 1, 0 }
  0x25   : > { %p83_p10 = scmp.eq.s32.totalorder %s78_s10, 0  ;;  %s532_s18 = sshll.u32 %s197_s11, 4 }
  0x26   : > { %s551_s25 = sshll.u32 %s782_s16, 8  ;;  %s201_s5 = scalar_lea.vmem [#allocation6], %s532_s18 }
  0x27   : > { %s915_s19 = scalar_select %p83_p10, %s774_s14, %s85_s7  }
  0x28   : > { %s210_s29 = scalar_lea.hbm %s1014_s1, %s551_s25  ;;  %s211_s6 = sshll.u32 %s201_s5, 4  ;;  %s212_s6 = int_to_ptr.vmem [resolvable:$true] %s211_s6 }
  0x29   : > { %p923_p2 = pnand %p587_p0, %p900_p12  ;;  %s198_s30 = scalar_lea.sflag [#allocation7], %s197_s11 }
  0x2a   : > { %s687_s10 = scalar_lea.vmem %s212_s6, 256  ;;  %s791_s7 = smov [#allocation6]  }
  0x2b   : > { %p676_p3 = pneg %p923_p2  ;;  %p688_p5 = scmp.ne.s32.totalorder %s212_s6, %s687_s10 }
  0x2c   : > { %s692_s4 = sshll.u32 %s791_s7, 4  ;;  %s693_s4 = int_to_ptr.vmem [resolvable:$false] %s692_s4 }
  0x2d   : > { %p690_p7 = pnand %p688_p5, %p676_p3  ;;  %s694_s25 = scalar_lea.vmem %s693_s4, 512 }
  0x2e   : > { %p695_p9 = scmp.lt.s32.totalorder %s212_s6, %s693_s4  ;;  %p696_p11 = scmp.lt.s32.totalorder %s694_s25, %s687_s10 }
  0x2f   : > { %p691_p6 = pneg %p690_p7 }
  0x30   : > { %p697_p10 = por %p696_p11, %p695_p9 }
  0x32   : > { %p698_p13 = pnand %p697_p10, %p691_p6 }
  0x34   : > { %701 = shalt.err (!%p698_p13)
}
  0x35   : > { %s1029_s8 = smov 4   ;;  %s1030_s18 = smov 64  }
  0x36   : > { %581 = dma.hbm_to_vmem [thread:$0]  (!%p923_p2), %s210_s29, 256, %s212_s6, %s198_s30, %s1030_s18, %s1030_s18, %s1029_s8  }
  0x37   : > { %232 = sbr.rel (%p871_p8) target bundleno = 299 (0x12b), region = 32 }
  0x3c   : > { %753 = dma.done.wait (%p851_p1), [#allocation4], 128  }
  0x3d   : > { %755 = vsyncadd (%p851_p1), [#allocation4], 4294967168  ;;  %s941_s4 = sand.u32 1, %s770_s13  }
  0x3e   : > { %s537_s11 = sshll.u32 %s941_s4, 4  ;;  %s239_s26 = scalar_lea.sflag [#allocation7], %s941_s4 }
  0x3f   : > { %s242_s27 = scalar_lea.vmem [#allocation6], %s537_s11 }
  0x40   : > { %757 = dma.done.wait (%p861_p4), %s239_s26, 256  }
  0x41   : > { %759 = vsyncadd (%p861_p4), %s239_s26, 4294967040  ;;  %vm285_vm0 = vcmask 261120   ;;  %v792_v0 = vmov 0.0   ;;  %vm793_vm1 = vmmov 0   ;;  %v645_v1 = vld [vmem:[%s242_s27 + $0x8] sm:$0xff]   ;;  %v646_v2 = vld [vmem:[%s242_s27] sm:$0xff]  }
  0x42   : > { %558 = vmatprep.subr.bf16.mxu0 %v792_v0  ;;  %562 = vmatprep.mubr.msk.bf16.mxu0 %vm793_vm1, %v792_v0  ;;  %286 = vst.msk [vmem:[#allocation2] sm:$0xff] %vm285_vm0, %v792_v0  ;;  %287 = vst.msk [vmem:[#allocation2 + $0x8] sm:$0xff] %vm285_vm0, %v792_v0  ;;  %v647_v3 = vld [vmem:[#allocation3] sm:$0xff]   ;;  %p273_p1 = scmp.lt.s32.totalorder %s778_s15, 2  ;;  %s538_s29 = sshll.u32 %s941_s4, 3  ;;  %vm384_vm2 = vcmask 257024  }
  0x43   : > { %559 = vmatpush3.bf16.msra.mxu0 %v645_v1  ;;  %s554_s5 = sshll.u32 %s778_s15, 7  ;;  %s270_s6 = scalar_lea.vmem [#allocation8], %s538_s29 }
  0x44   : > { %560 = vmatprep.subr.bf16.mxu0 %v792_v0  ;;  %s274_s20 = scalar_select %p273_p1, %s778_s15, 2 }
  0x45   : > { %s404_s21 = sshll.u32 %s270_s6, 4  ;;  %s964_s25 = scalar_lea.hbm %s1016_s3, %s554_s5  ;;  %s966_s21 = int_to_ptr.vmem [resolvable:$true] %s404_s21 }
  0x46   : > { %s278_s30 = scalar_lea.vmem %s1015_s2, %s274_s20  ;;  %s388_s8 = scalar_lea.sflag [#allocation5], %s941_s4 }
  0x47   : > { %561 = vmatpush3.bf16.msra.mxu0 %v646_v2  ;;  %v543_v12 = vld [vmem:[%s278_s30] ss:$0 sm:$0xff]  ;;  %s702_s18 = scalar_lea.vmem %s966_s21, 128  ;;  %p1031_p8 = scmp.ne.s32.totalorder %s1027_s9, 0 }
  0x48   : > { %p703_p4 = scmp.ne.s32.totalorder %s966_s21, %s702_s18  ;;  %s794_s15 = smov [#allocation8]  }
  0x49   : > { %v288_v4 = vld [vmem:[#allocation2] sm:$0xff]  ;;  %v289_v8 = vld [vmem:[#allocation2 + $0x8] sm:$0xff]  ;;  %s706_s11 = sshll.u32 %s794_s15, 4  ;;  %s707_s11 = int_to_ptr.vmem [resolvable:$false] %s706_s11 }
  0x4a   : > { %563 = vmatmul.mubr.msk.bf16.vlgmr.msra.gmra.mxu0 %vm285_vm0, %v647_v3  ;;  %p704_p12 = pnand %p703_p4, %p1031_p8  ;;  %s708_s26 = scalar_lea.vmem %s707_s11, 256 }
  0x4b   : > { %p709_p0 = scmp.lt.s32.totalorder %s966_s21, %s707_s11  ;;  %p710_p2 = scmp.lt.s32.totalorder %s708_s26, %s702_s18 }
  0x4c   : > { %p705_p13 = pneg %p704_p12 }
  0x4d   : > { %p711_p3 = por %p710_p2, %p709_p0 }
  0x4f   : > { %p712_p5 = pnand %p711_p3, %p705_p13 }
 0x10a   : > { %v351_v5 = vpop.f32.mrf.mxu0 }
 0x10b   : > { %v358_v6 = vadd.f32 %v351_v5, %v288_v4 }
 0x10c   : > { %v564_v7 = vpop.f32.mrf.mxu0 }
 0x10d   : > { %360 = vst.msk [vmem:[#allocation2] sm:$0xff] %vm285_vm0, %v358_v6 }
 0x10e   : > { %v354_v9 = vpop.f32.mrf.mxu0 }
 0x10f   : > { %v359_v10 = vadd.f32 %v354_v9, %v289_v8 }
 0x110   : > { %v565_v11 = vpop.f32.mrf.mxu0 }
 0x111   : > { %361 = vst.msk [vmem:[#allocation2 + $0x8] sm:$0xff] %vm285_vm0, %v359_v10 }
 0x114   : > { %v365_v13 = vld [vmem:[#allocation2] sm:$0xff] }
 0x115   : > { %v374_v14 = vadd.f32 %v543_v12, %v365_v13 }
 0x117   : > { %v552_v15 = vpack.c.bf16 %v374_v14, %v374_v14 }
 0x118   : > { %v366_v16 = vld [vmem:[#allocation2 + $0x8] sm:$0xff] }
 0x119   : > { %v375_v17 = vadd.f32 %v543_v12, %v366_v16  ;;  %385 = vst.msk [vmem:[%s270_s6] sm:$0xf] %vm384_vm2, %v552_v15 }
 0x11b   : > { %v553_v18 = vpack.c.bf16 %v375_v17, %v375_v17 }
 0x11d   : > { %386 = vst.msk [vmem:[%s270_s6 + $0x4] sm:$0xf] %vm384_vm2, %v553_v18 }
 0x11e   : > { %715 = shalt.err (!%p712_p5)
}
 0x11f   : > { %s716_s27 = scalar_lea.hbm %s964_s25, 128  ;;  %s720_s24 = scalar_lea.hbm %s1016_s3, 384 }
 0x120   : > { %p717_p7 = scmp.ne.s32.totalorder %s964_s25, %s716_s27  ;;  %p721_p11 = scmp.lt.s32.totalorder %s964_s25, %s1016_s3 }
 0x121   : > { %p722_p10 = scmp.lt.s32.totalorder %s720_s24, %s716_s27 }
 0x122   : > { %p718_p6 = pnand %p717_p7, %p1031_p8 }
 0x123   : > { %p723_p1 = por %p722_p10, %p721_p11 }
 0x124   : > { %p719_p9 = pneg %p718_p6 }
 0x126   : > { %p724_p4 = pnand %p723_p1, %p719_p9 }
 0x128   : > { %727 = shalt.err (!%p724_p4)
}
 0x129   : > { %s795_s5 = smov 64   ;;  %s796_s6 = smov 4  }
 0x12a   : > { %572 = dma.vmem_to_hbm [thread:$0]  (%p1031_p8), %s966_s21, 128, %s964_s25, %s388_s8, %s795_s5, %s795_s5, %s796_s6  }
 0x12b PF: > { %p589_p12 = scmp.ge.s32.totalorder %s786_s17, 2  ;;  %s419_s10 = sand.u32 1, %s766_s12  }
 0x12c   : > { %p1032_p13 = scmp.ne.s32.totalorder %s1023_s23, 0  ;;  %s420_s7 = scalar_lea.sflag [#allocation5], %s419_s10 }
 0x12e   : > { %p583_p0 = pnand %p589_p12, %p1032_p13 }
 0x130   : > { %p584_p2 = pneg %p583_p0 }
 0x132   : > { %761 = dma.done.wait (%p584_p2), %s420_s7, 128  }
 0x133   : > { %763 = vsyncadd (%p584_p2), %s420_s7, 4294967168  ;;  %s20_s17 = sadd.s32 1, %s786_s17   ;;  %s1033_s12 = smov %s770_s13 }
 0x134   : > { %p17_p3 = scmp.ge.s32.totalorder %s20_s17, 5   ;;  %s1034_s13 = smov %s774_s14 }
 0x135   : > { %s1035_s14 = smov %s915_s19  ;;  %s1036_s15 = smov %s782_s16 }
 0x136   : > { %s1037_s16 = smov %s1039_s28  ;;  %19 = sbr.rel (!%p17_p3) target bundleno = 7 (0x7), region = 94 }
 0x13b   :  { %425 = vsyncpa [#allocation4], 1 }
 0x13c   :  { %427 = vsyncpa [#allocation4 + $0x1], 1 }
 0x13d   :  { %428 = vsyncpa [#allocation7], 1 }
 0x13e   :  { %430 = vsyncpa [#allocation7 + $0x1], 1 }
 0x13f   :  { %431 = vsyncpa [#allocation5], 1 }
 0x140   :  { %433 = vsyncpa [#allocation5 + $0x1], 1 }

</bundles_post_ra>
